<compile_context>
chip_gen: v6e
topology: v6e:2x2x1
jax: 0.10.0
libtpu: 0.0.40
codegen_flags: <defaults>
</compile_context>

<pallas_src>
import functools

import jax
import jax.numpy as jnp
from jax.experimental import pallas as pl
from jax.experimental.pallas import tpu as pltpu


def _kv_gather_none_kernel(p2, topk, r_idx_ref, kv_hbm, o_hbm, sem):
    """Pure HBM->HBM gather: out[b, i, t, :] = kv[b, r_idx[b, i, t], :]."""
    b = pl.program_id(0)
    i = pl.program_id(1)
    slot = i & 1

    def issue(row, s):
        base = (b * p2 + row) * topk
        for t in range(topk):
            idx = r_idx_ref[base + t]
            pltpu.make_async_copy(
                kv_hbm.at[b, idx], o_hbm.at[b, row, t], sem.at[s, t]
            ).start()

    @pl.when(i == 0)              # prime the ring for this batch row
    def _():
        issue(0, 0)

    @pl.when(i + 1 < p2)          # keep next row's gathers in flight
    def _():
        issue(i + 1, 1 - slot)

    # Drain the current row (only sem + transfer size matter for the wait).
    for t in range(topk):
        pltpu.make_async_copy(
            kv_hbm.at[0, 0], o_hbm.at[0, 0, t], sem.at[slot, t]
        ).wait()


def _kv_gather_soft_kernel(p2, topk, r_idx_ref, r_w_ref, kv_hbm, o_ref, buf, sem):
    """Gather into double-buffered VMEM, scale by routing weight, store dense."""
    b = pl.program_id(0)
    i = pl.program_id(1)
    slot = i & 1

    # Scalar reads before any DMA wait (waits stall SMEM store->load forwarding).
    wbase = (b * p2 + i) * topk
    weights = [r_w_ref[wbase + t] for t in range(topk)]   # f32 scalars

    def issue(row, s):
        base = (b * p2 + row) * topk
        for t in range(topk):
            idx = r_idx_ref[base + t]
            pltpu.make_async_copy(
                kv_hbm.at[b, idx], buf.at[s, t], sem.at[s, t]
            ).start()

    @pl.when(i == 0)              # prime
    def _():
        issue(0, 0)

    @pl.when(i + 1 < p2)          # prefetch next row into the other buffer
    def _():
        issue(i + 1, 1 - slot)

    for t in range(topk):         # wait for the current row's gathers
        pltpu.make_async_copy(
            kv_hbm.at[0, 0], buf.at[slot, t], sem.at[slot, t]
        ).wait()

    chunk = buf[slot]             # (topk, w2*c_kv), kv dtype
    for t in range(topk):
        # multiply in f32 (weight dtype), cast explicitly back to output dtype
        o_ref[t, :] = (chunk[t] * weights[t]).astype(o_ref.dtype)


def kv_gather(r_idx, r_weight, kv, mul_weight="none"):
    """Pallas implementation of KVGather.forward."""
    assert mul_weight in ("none", "soft", "hard")
    if mul_weight == "hard":
        # TODO(synk): differentiable hard routing is NotImplemented in the reference too.
        raise NotImplementedError("differentiable hard routing TBA")

    n, p2, w2, c_kv = kv.shape
    topk = r_idx.shape[-1]
    w2c = w2 * c_kv

    # Lane-dense view of kv; reshape is a free view on contiguous data.
    kv2 = kv.reshape(n, p2, w2c)
    # 1-D scalar-prefetch table: avoids SMEM last-dim padding to 128.
    r_idx_flat = r_idx.reshape(-1).astype(jnp.int32)

    itemsize = jnp.dtype(kv.dtype).itemsize
    moved = n * p2 * topk * w2c * itemsize
    cost = pl.CostEstimate(
        flops=(n * p2 * topk * w2c) if mul_weight == "soft" else 0,
        transcendentals=0,
        bytes_accessed=2 * moved + 4 * r_idx_flat.size,
    )
    # Batch axis is parallel (megacore-shardable on v7x); p2 axis is
    # 'arbitrary' because the depth-2 DMA ring carries state across it.
    cparams = pltpu.CompilerParams(
        dimension_semantics=("parallel", "arbitrary"),
    )

    if mul_weight == "none":
        grid_spec = pltpu.PrefetchScalarGridSpec(
            num_scalar_prefetch=1,                         # only r_idx
            grid=(n, p2),
            in_specs=[pl.BlockSpec(memory_space=pl.ANY)],  # kv stays in HBM
            out_specs=pl.BlockSpec(memory_space=pl.ANY),   # out written by DMA only
            scratch_shapes=[pltpu.SemaphoreType.DMA((2, topk))],
        )
        out = pl.pallas_call(
            functools.partial(_kv_gather_none_kernel, p2, topk),
            out_shape=jax.ShapeDtypeStruct((n, p2, topk, w2c), kv.dtype),
            grid_spec=grid_spec,
            compiler_params=cparams,
            cost_estimate=cost,
        )(r_idx_flat, kv2)
    else:  # 'soft'
        r_w_flat = r_weight.reshape(-1).astype(jnp.float32)
        grid_spec = pltpu.PrefetchScalarGridSpec(
            num_scalar_prefetch=2,                         # r_idx, r_weight
            grid=(n, p2),
            in_specs=[pl.BlockSpec(memory_space=pl.ANY)],  # kv stays in HBM
            out_specs=pl.BlockSpec(
                (pl.Squeezed(), pl.Squeezed(), topk, w2c), # kernel sees (topk, w2c)
                lambda b, i, idx_ref, w_ref: (b, i, 0, 0),
            ),
            scratch_shapes=[
                pltpu.VMEM((2, topk, w2c), kv.dtype),      # double-buffered gather
                pltpu.SemaphoreType.DMA((2, topk)),
            ],
        )
        out = pl.pallas_call(
            functools.partial(_kv_gather_soft_kernel, p2, topk),
            out_shape=jax.ShapeDtypeStruct((n, p2, topk, w2c), kv.dtype),
            grid_spec=grid_spec,
            compiler_params=cparams,
            cost_estimate=cost,
        )(r_idx_flat, r_w_flat, kv2)

    return out.reshape(n, p2, topk, w2, c_kv)


def kv_gather_ref(r_idx, r_weight, kv, mul_weight="none"):
    """Pure-JAX reference mirroring the PyTorch torch.gather semantics."""
    n, p2, w2, c_kv = kv.shape
    out = jnp.take_along_axis(
        jnp.broadcast_to(kv[:, None], (n, p2, p2, w2, c_kv)),
        r_idx[:, :, :, None, None].astype(jnp.int32),
        axis=2,
    )
    if mul_weight == "soft":
        out = r_weight[:, :, :, None, None] * out
    return out


if __name__ == "__main__":
    key = jax.random.PRNGKey(0)
    k_idx, k_w, k_kv = jax.random.split(key, 3)

    n, p2, topk, w2, c_kv = 2, 4, 2, 16, 32

    r_idx = jax.random.randint(k_idx, (n, p2, topk), 0, p2, dtype=jnp.int32)
    r_weight = jax.random.uniform(k_w, (n, p2, topk), dtype=jnp.float32)
    kv = jax.random.normal(k_kv, (n, p2, w2, c_kv), dtype=jnp.float32)

    ok = True
    for mode in ("none", "soft"):
        out = jax.block_until_ready(kv_gather(r_idx, r_weight, kv, mul_weight=mode))
        ref = kv_gather_ref(r_idx, r_weight, kv, mul_weight=mode)
        if out.shape != (n, p2, topk, w2, c_kv):
            ok = False
        if not bool(jnp.allclose(out, ref, atol=1e-5, rtol=1e-5)):
            ok = False

    print("KERNEL_OK" if ok else "KERNEL_MISMATCH")
</pallas_src>

<mosaic_0001>
module attributes {stable_mosaic.version = 11 : i64} {
  func.func @_kv_gather_none_kernel(%arg0: i32, %arg1: i32, %arg2: memref<16xi32, #tpu.memory_space<smem>>, %arg3: memref<2x4x512xf32, #tpu.memory_space<any>>, %arg4: memref<2x4x2x512xf32, #tpu.memory_space<any>>, %arg5: memref<2x2x!tpu.dma_semaphore, #tpu.memory_space<semaphore_mem>>) attributes {dimension_semantics = [#tpu.dimension_semantics<parallel>, #tpu.dimension_semantics<arbitrary>], iteration_bounds = array<i64: 2, 4>, scalar_prefetch = 1 : i64, scratch_operands = 1 : i64, tpu.core_type = #tpu.core_type<tc>, window_params = [{}, {}]} {
    %c1_i32 = arith.constant 1 : i32
    %0 = arith.andi %arg1, %c1_i32 : i32
    %c0_i32 = arith.constant 0 : i32
    %1 = arith.cmpi eq, %arg1, %c0_i32 : i32
    %2 = arith.extui %1 : i1 to i32
    %c0_i32_0 = arith.constant 0 : i32
    %3 = arith.cmpi ne, %2, %c0_i32_0 : i32
    scf.if %3 {
      %c4_i32_19 = arith.constant 4 : i32
      %20 = arith.muli %arg0, %c4_i32_19 : i32
      %c0_i32_20 = arith.constant 0 : i32
      %21 = arith.addi %20, %c0_i32_20 : i32
      %c2_i32 = arith.constant 2 : i32
      %22 = arith.muli %21, %c2_i32 : i32
      %c0_i32_21 = arith.constant 0 : i32
      %23 = arith.addi %22, %c0_i32_21 : i32
      %24 = arith.index_cast %23 : i32 to index
      %25 = memref.load %arg2[%24] : memref<16xi32, #tpu.memory_space<smem>>
      %c0_i32_22 = arith.constant 0 : i32
      %c0_i32_23 = arith.constant 0 : i32
      %c0_i32_24 = arith.constant 0 : i32
      %c0_i32_25 = arith.constant 0 : i32
      %c0_i32_26 = arith.constant 0 : i32
      %26 = tpu.memref_slice %arg3[%arg0, %25, %c0_i32_26] : memref<2x4x512xf32, #tpu.memory_space<any>> -> memref<1x1x512xf32, #tpu.memory_space<any>>
      %27 = tpu.memref_squeeze %26 : memref<1x1x512xf32, #tpu.memory_space<any>> -> memref<512xf32, #tpu.memory_space<any>>
      %c0_i32_27 = arith.constant 0 : i32
      %28 = tpu.memref_slice %arg4[%arg0, %c0_i32_22, %c0_i32_23, %c0_i32_27] : memref<2x4x2x512xf32, #tpu.memory_space<any>> -> memref<1x1x1x512xf32, #tpu.memory_space<any>>
      %29 = tpu.memref_squeeze %28 : memref<1x1x1x512xf32, #tpu.memory_space<any>> -> memref<512xf32, #tpu.memory_space<any>>
      %30 = tpu.memref_slice %arg5[%c0_i32_24, %c0_i32_25] : memref<2x2x!tpu.dma_semaphore, #tpu.memory_space<semaphore_mem>> -> memref<1x1x!tpu.dma_semaphore, #tpu.memory_space<semaphore_mem>>
      %31 = tpu.memref_squeeze %30 : memref<1x1x!tpu.dma_semaphore, #tpu.memory_space<semaphore_mem>> -> memref<!tpu.dma_semaphore, #tpu.memory_space<semaphore_mem>>
      tpu.enqueue_dma source(%27 : memref<512xf32, #tpu.memory_space<any>>) target(%29 : memref<512xf32, #tpu.memory_space<any>>) target_semaphore(%31 : memref<!tpu.dma_semaphore, #tpu.memory_space<semaphore_mem>>)
      %c1_i32_28 = arith.constant 1 : i32
      %32 = arith.addi %22, %c1_i32_28 : i32
      %33 = arith.index_cast %32 : i32 to index
      %34 = memref.load %arg2[%33] : memref<16xi32, #tpu.memory_space<smem>>
      %c0_i32_29 = arith.constant 0 : i32
      %c1_i32_30 = arith.constant 1 : i32
      %c0_i32_31 = arith.constant 0 : i32
      %c1_i32_32 = arith.constant 1 : i32
      %c0_i32_33 = arith.constant 0 : i32
      %35 = tpu.memref_slice %arg3[%arg0, %34, %c0_i32_33] : memref<2x4x512xf32, #tpu.memory_space<any>> -> memref<1x1x512xf32, #tpu.memory_space<any>>
      %36 = tpu.memref_squeeze %35 : memref<1x1x512xf32, #tpu.memory_space<any>> -> memref<512xf32, #tpu.memory_space<any>>
      %c0_i32_34 = arith.constant 0 : i32
      %37 = tpu.memref_slice %arg4[%arg0, %c0_i32_29, %c1_i32_30, %c0_i32_34] : memref<2x4x2x512xf32, #tpu.memory_space<any>> -> memref<1x1x1x512xf32, #tpu.memory_space<any>>
      %38 = tpu.memref_squeeze %37 : memref<1x1x1x512xf32, #tpu.memory_space<any>> -> memref<512xf32, #tpu.memory_space<any>>
      %39 = tpu.memref_slice %arg5[%c0_i32_31, %c1_i32_32] : memref<2x2x!tpu.dma_semaphore, #tpu.memory_space<semaphore_mem>> -> memref<1x1x!tpu.dma_semaphore, #tpu.memory_space<semaphore_mem>>
      %40 = tpu.memref_squeeze %39 : memref<1x1x!tpu.dma_semaphore, #tpu.memory_space<semaphore_mem>> -> memref<!tpu.dma_semaphore, #tpu.memory_space<semaphore_mem>>
      tpu.enqueue_dma source(%36 : memref<512xf32, #tpu.memory_space<any>>) target(%38 : memref<512xf32, #tpu.memory_space<any>>) target_semaphore(%40 : memref<!tpu.dma_semaphore, #tpu.memory_space<semaphore_mem>>)
    } else {
    }
    %c1_i32_1 = arith.constant 1 : i32
    %4 = arith.addi %arg1, %c1_i32_1 : i32
    %c4_i32 = arith.constant 4 : i32
    %5 = arith.cmpi slt, %4, %c4_i32 : i32
    %6 = arith.extui %5 : i1 to i32
    %c0_i32_2 = arith.constant 0 : i32
    %7 = arith.cmpi ne, %6, %c0_i32_2 : i32
    scf.if %7 {
      %c1_i32_19 = arith.constant 1 : i32
      %20 = arith.addi %arg1, %c1_i32_19 : i32
      %c1_i32_20 = arith.constant 1 : i32
      %21 = arith.subi %c1_i32_20, %0 : i32
      %c4_i32_21 = arith.constant 4 : i32
      %22 = arith.muli %arg0, %c4_i32_21 : i32
      %23 = arith.addi %22, %20 : i32
      %c2_i32 = arith.constant 2 : i32
      %24 = arith.muli %23, %c2_i32 : i32
      %c0_i32_22 = arith.constant 0 : i32
      %25 = arith.addi %24, %c0_i32_22 : i32
      %26 = arith.index_cast %25 : i32 to index
      %27 = memref.load %arg2[%26] : memref<16xi32, #tpu.memory_space<smem>>
      %c0_i32_23 = arith.constant 0 : i32
      %c0_i32_24 = arith.constant 0 : i32
      %c0_i32_25 = arith.constant 0 : i32
      %28 = tpu.memref_slice %arg3[%arg0, %27, %c0_i32_25] : memref<2x4x512xf32, #tpu.memory_space<any>> -> memref<1x1x512xf32, #tpu.memory_space<any>>
      %29 = tpu.memref_squeeze %28 : memref<1x1x512xf32, #tpu.memory_space<any>> -> memref<512xf32, #tpu.memory_space<any>>
      %c0_i32_26 = arith.constant 0 : i32
      %30 = tpu.memref_slice %arg4[%arg0, %20, %c0_i32_23, %c0_i32_26] : memref<2x4x2x512xf32, #tpu.memory_space<any>> -> memref<1x1x1x512xf32, #tpu.memory_space<any>>
      %31 = tpu.memref_squeeze %30 : memref<1x1x1x512xf32, #tpu.memory_space<any>> -> memref<512xf32, #tpu.memory_space<any>>
      %32 = tpu.memref_slice %arg5[%21, %c0_i32_24] : memref<2x2x!tpu.dma_semaphore, #tpu.memory_space<semaphore_mem>> -> memref<1x1x!tpu.dma_semaphore, #tpu.memory_space<semaphore_mem>>
      %33 = tpu.memref_squeeze %32 : memref<1x1x!tpu.dma_semaphore, #tpu.memory_space<semaphore_mem>> -> memref<!tpu.dma_semaphore, #tpu.memory_space<semaphore_mem>>
      tpu.enqueue_dma source(%29 : memref<512xf32, #tpu.memory_space<any>>) target(%31 : memref<512xf32, #tpu.memory_space<any>>) target_semaphore(%33 : memref<!tpu.dma_semaphore, #tpu.memory_space<semaphore_mem>>)
      %c1_i32_27 = arith.constant 1 : i32
      %34 = arith.addi %24, %c1_i32_27 : i32
      %35 = arith.index_cast %34 : i32 to index
      %36 = memref.load %arg2[%35] : memref<16xi32, #tpu.memory_space<smem>>
      %c1_i32_28 = arith.constant 1 : i32
      %c1_i32_29 = arith.constant 1 : i32
      %c0_i32_30 = arith.constant 0 : i32
      %37 = tpu.memref_slice %arg3[%arg0, %36, %c0_i32_30] : memref<2x4x512xf32, #tpu.memory_space<any>> -> memref<1x1x512xf32, #tpu.memory_space<any>>
      %38 = tpu.memref_squeeze %37 : memref<1x1x512xf32, #tpu.memory_space<any>> -> memref<512xf32, #tpu.memory_space<any>>
      %c0_i32_31 = arith.constant 0 : i32
      %39 = tpu.memref_slice %arg4[%arg0, %20, %c1_i32_28, %c0_i32_31] : memref<2x4x2x512xf32, #tpu.memory_space<any>> -> memref<1x1x1x512xf32, #tpu.memory_space<any>>
      %40 = tpu.memref_squeeze %39 : memref<1x1x1x512xf32, #tpu.memory_space<any>> -> memref<512xf32, #tpu.memory_space<any>>
      %41 = tpu.memref_slice %arg5[%21, %c1_i32_29] : memref<2x2x!tpu.dma_semaphore, #tpu.memory_space<semaphore_mem>> -> memref<1x1x!tpu.dma_semaphore, #tpu.memory_space<semaphore_mem>>
      %42 = tpu.memref_squeeze %41 : memref<1x1x!tpu.dma_semaphore, #tpu.memory_space<semaphore_mem>> -> memref<!tpu.dma_semaphore, #tpu.memory_space<semaphore_mem>>
      tpu.enqueue_dma source(%38 : memref<512xf32, #tpu.memory_space<any>>) target(%40 : memref<512xf32, #tpu.memory_space<any>>) target_semaphore(%42 : memref<!tpu.dma_semaphore, #tpu.memory_space<semaphore_mem>>)
    } else {
    }
    %c0_i32_3 = arith.constant 0 : i32
    %c0_i32_4 = arith.constant 0 : i32
    %c0_i32_5 = arith.constant 0 : i32
    %c0_i32_6 = arith.constant 0 : i32
    %c0_i32_7 = arith.constant 0 : i32
    %c0_i32_8 = arith.constant 0 : i32
    %c0_i32_9 = arith.constant 0 : i32
    %8 = tpu.memref_slice %arg3[%c0_i32_3, %c0_i32_4, %c0_i32_9] : memref<2x4x512xf32, #tpu.memory_space<any>> -> memref<1x1x512xf32, #tpu.memory_space<any>>
    %9 = tpu.memref_squeeze %8 : memref<1x1x512xf32, #tpu.memory_space<any>> -> memref<512xf32, #tpu.memory_space<any>>
    %c0_i32_10 = arith.constant 0 : i32
    %10 = tpu.memref_slice %arg4[%c0_i32_5, %c0_i32_6, %c0_i32_7, %c0_i32_10] : memref<2x4x2x512xf32, #tpu.memory_space<any>> -> memref<1x1x1x512xf32, #tpu.memory_space<any>>
    %11 = tpu.memref_squeeze %10 : memref<1x1x1x512xf32, #tpu.memory_space<any>> -> memref<512xf32, #tpu.memory_space<any>>
    %12 = tpu.memref_slice %arg5[%0, %c0_i32_8] : memref<2x2x!tpu.dma_semaphore, #tpu.memory_space<semaphore_mem>> -> memref<1x1x!tpu.dma_semaphore, #tpu.memory_space<semaphore_mem>>
    %13 = tpu.memref_squeeze %12 : memref<1x1x!tpu.dma_semaphore, #tpu.memory_space<semaphore_mem>> -> memref<!tpu.dma_semaphore, #tpu.memory_space<semaphore_mem>>
    tpu.wait_dma2 semaphore(%13 : memref<!tpu.dma_semaphore, #tpu.memory_space<semaphore_mem>>) src(%9 : memref<512xf32, #tpu.memory_space<any>>) dst(%11 : memref<512xf32, #tpu.memory_space<any>>)
    %c0_i32_11 = arith.constant 0 : i32
    %c0_i32_12 = arith.constant 0 : i32
    %c0_i32_13 = arith.constant 0 : i32
    %c0_i32_14 = arith.constant 0 : i32
    %c1_i32_15 = arith.constant 1 : i32
    %c1_i32_16 = arith.constant 1 : i32
    %c0_i32_17 = arith.constant 0 : i32
    %14 = tpu.memref_slice %arg3[%c0_i32_11, %c0_i32_12, %c0_i32_17] : memref<2x4x512xf32, #tpu.memory_space<any>> -> memref<1x1x512xf32, #tpu.memory_space<any>>
    %15 = tpu.memref_squeeze %14 : memref<1x1x512xf32, #tpu.memory_space<any>> -> memref<512xf32, #tpu.memory_space<any>>
    %c0_i32_18 = arith.constant 0 : i32
    %16 = tpu.memref_slice %arg4[%c0_i32_13, %c0_i32_14, %c1_i32_15, %c0_i32_18] : memref<2x4x2x512xf32, #tpu.memory_space<any>> -> memref<1x1x1x512xf32, #tpu.memory_space<any>>
    %17 = tpu.memref_squeeze %16 : memref<1x1x1x512xf32, #tpu.memory_space<any>> -> memref<512xf32, #tpu.memory_space<any>>
    %18 = tpu.memref_slice %arg5[%0, %c1_i32_16] : memref<2x2x!tpu.dma_semaphore, #tpu.memory_space<semaphore_mem>> -> memref<1x1x!tpu.dma_semaphore, #tpu.memory_space<semaphore_mem>>
    %19 = tpu.memref_squeeze %18 : memref<1x1x!tpu.dma_semaphore, #tpu.memory_space<semaphore_mem>> -> memref<!tpu.dma_semaphore, #tpu.memory_space<semaphore_mem>>
    tpu.wait_dma2 semaphore(%19 : memref<!tpu.dma_semaphore, #tpu.memory_space<semaphore_mem>>) src(%15 : memref<512xf32, #tpu.memory_space<any>>) dst(%17 : memref<512xf32, #tpu.memory_space<any>>)
    return
  }
}

</mosaic_0001>

<bundles_post_ra>
// kernel: tpu_custom_call.1
= control target key start
LH: loop header
LB: loop body
LE: loop exit
PB: predicated region body
PF: predicated region fallthrough
CT: control target
= control target key end

     0   :  { %s385_s9 = smov [#allocation4]   ;;  %s545_s0 = inlined_call_operand.hbm [shape: s32[16], index: 0, kind: input, shape index: {}]   ;;  %s546_s1 = inlined_call_operand.hbm [shape: f32[2,4,512], index: 1, kind: input, shape index: {}]   ;;  %s547_s2 = inlined_call_operand.hbm [shape: f32[2,4,2,512], index: 2, kind: output, shape index: {}]  }
   0x1   :  { %8 = dma.hbm_to_smem %s545_s0, 16, %s385_s9, [#allocation3] }
   0x2   :  { %367 = dma.done.wait [#allocation3], 16 }
   0x3   :  { %368 = vsyncadd [#allocation3], 4294967280 }
   0x4   :  { %10 = sfence }
   0x5   :  { %s416_s12 = smov 0   ;;  %s418_s13 = smov 0  }
   0x6   :  { %s420_s14 = smov 0  }
   0x7 LB: > { %s432_s0 = sadd.s32 1, %s375_s12  ;;  %s22_s15 = sadd.s32 1, %s379_s13  ;;  %s383_s14 = sphi %s420_s14, %s16_s14   ;;  %s379_s13 = sphi %s418_s13, %s549_s13   ;;  %s375_s12 = sphi %s416_s12, %s548_s12  }
   0x8   : > { %p20_p0 = scmp.ge.s32.totalorder %s432_s0, 4  ;;  %s26_s16 = sand.u32 1, %s375_s12 }
   0x9   : > { %p308_p1 = scmp.eq.s32.totalorder %s375_s12, 0 }
   0xa   : > { %s439_s17 = scalar_select %p20_p0, 0, %s432_s0  }
   0xb   : > { %s551_s15 = smov (!%p20_p0, %s22_s15), %s379_s13 }
   0xc   : > { %p24_p2 = scmp.ge.s32.totalorder %s551_s15, 2 }
   0xe   : > { %s553_s15 = smov (%p24_p2, %s551_s15), 0 }
   0xf   : > { %s248_s18 = sshll.u32 %s379_s13, 3  ;;  %s280_s22 = sshll.u32 %s379_s13, 9 }
  0x10   : > { %s283_s19 = scalar_select %p308_p1, [#allocation4], [#allocation13] }
  0x11   : > { %s284_s20 = scalar_select %p308_p1, %s248_s18, 0 }
  0x12   : > { %s386_s23 = smov 64   ;;  %s387_s24 = smov 32  }
  0x13   : > { %s32_s21 = sld [smem:[%s283_s19 + %s284_s20]]  ;;  %s388_s25 = smov 1  }
  0x14   : > { %285 = sst [smem:[#allocation6]] (%p308_p1), %s386_s23  ;;  %s457_s26 = sshll.u32 %s379_s13, 4 }
  0x15   : > { %286 = sst [smem:[#allocation6 + $0x1]] (%p308_p1), %s387_s24  ;;  %s462_s29 = scalar_lea.hbm %s547_s2, %s280_s22 }
  0x16   : > { %287 = sst [smem:[#allocation6 + $0x2]] (%p308_p1), %s388_s25  ;;  %s57_s11 = sadd.s32 1, %s248_s18 }
  0x17   : > { %s389_s19 = smov [#allocation2]   ;;  %s390_s20 = smov 131072  }
  0x18   : > { %s391_s22 = smov 0   ;;  %s555_s11 = smov (!%p308_p1, %s57_s11), 0 }
  0x19   : > { %s33_s30 = sshrl.u32 %s32_s21, 2  ;;  %s34_s3 = sand.u32 3, %s32_s21  }
  0x1a   : > { %s249_s4 = sshll.u32 %s33_s30, 4  ;;  %p309_p3 = scmp.lt.s32.totalorder %s432_s0, 4 }
  0x1b   : > { %s36_s5 = sadd.s32 %s249_s4, %s34_s3  ;;  %s201_s4 = scalar_lea.hbm %s462_s29, 16 }
  0x1c   : > { %s38_s6 = sadd.s32 %s457_s26, %s36_s5 }
  0x1d   : > { %s251_s7 = sshll.u32 %s38_s6, 4 }
  0x1e   : > { %s40_s10 = scalar_lea.hbm %s546_s1, %s251_s7 }
  0x1f   : > { %288 = dma.general (%p308_p1), %s40_s10, 64, %s462_s29, %s389_s19, %s390_s20, [#allocation6], %s391_s22, 0  }
  0x20   : > { %s289_s21 = scalar_select %p308_p1, [#allocation4], [#allocation14] }
  0x21   : > { %291 = sst [smem:[#allocation8]] (%p308_p1), %s386_s23  ;;  %s392_s10 = smov [#allocation2 + $0x1]  }
  0x22   : > { %s58_s27 = sld [smem:[%s289_s21 + %s555_s11]] }
  0x23   : > { %292 = sst [smem:[#allocation8 + $0x1]] (%p308_p1), %s387_s24 }
  0x24   : > { %293 = sst [smem:[#allocation8 + $0x2]] (%p308_p1), %s388_s25 }
  0x28   : > { %s59_s28 = sshrl.u32 %s58_s27, 2  ;;  %s60_s18 = sand.u32 3, %s58_s27  }
  0x29   : > { %s254_s30 = sshll.u32 %s59_s28, 4 }
  0x2a   : > { %s62_s3 = sadd.s32 %s254_s30, %s60_s18 }
  0x2b   : > { %s63_s5 = sadd.s32 %s457_s26, %s62_s3 }
  0x2c   : > { %s255_s6 = sshll.u32 %s63_s5, 4 }
  0x2d   : > { %s65_s9 = scalar_lea.hbm %s546_s1, %s255_s6 }
  0x2e   : > { %294 = dma.general (%p308_p1), %s65_s9, 64, %s201_s4, %s392_s10, %s390_s20, [#allocation8], %s391_s22, 0  }
  0x2f   : > { %s88_s23 = ssub.s32 1, %s26_s16  ;;  %s259_s24 = sshll.u32 %s379_s13, 2 }
  0x30   : > { %s90_s25 = sadd.s32 %s259_s24, %s432_s0  ;;  %s264_s29 = sshll.u32 %s375_s12, 3 }
  0x31   : > { %s260_s11 = sshll.u32 %s90_s25, 1  ;;  %s265_s19 = sshll.u32 %s379_s13, 5 }
  0x32   : > { %s296_s20 = scalar_select %p309_p3, [#allocation4], [#allocation15] }
  0x33   : > { %s297_s22 = scalar_select %p309_p3, %s260_s11, 0 }
  0x34   : > { %s210_s21 = sadd.s32 %s265_s19, %s264_s29  ;;  %s267_s18 = sshll.u32 %s88_s23, 1 }
  0x35   : > { %s92_s27 = sld [smem:[%s296_s20 + %s297_s22]]  ;;  %s266_s28 = sshll.u32 %s210_s21, 4 }
  0x36   : > { %s502_s4 = scalar_lea.hbm %s547_s2, %s266_s28  ;;  %s393_s5 = smov 64  }
  0x37   : > { %298 = sst [smem:[#allocation10]] (%p309_p3), %s393_s5  ;;  %s394_s6 = smov 32  }
  0x38   : > { %299 = sst [smem:[#allocation10 + $0x1]] (%p309_p3), %s394_s6  ;;  %s395_s13 = smov 1  }
  0x39   : > { %300 = sst [smem:[#allocation10 + $0x2]] (%p309_p3), %s395_s13  ;;  %s213_s10 = scalar_lea.hbm %s502_s4, 128 }
  0x3a   : > { %s121_s22 = sadd.s32 1, %s260_s11  ;;  %s107_s21 = scalar_lea.sflag [#allocation2], %s267_s18 }
  0x3b   : > { %s93_s7 = sshrl.u32 %s92_s27, 2  ;;  %s94_s8 = sand.u32 3, %s92_s27  }
  0x3c   : > { %s261_s9 = sshll.u32 %s93_s7, 4  ;;  %s396_s28 = smov 131072  }
  0x3d   : > { %s96_s23 = sadd.s32 %s261_s9, %s94_s8  ;;  %s397_s30 = smov 0  }
  0x3e   : > { %s98_s24 = sadd.s32 %s457_s26, %s96_s23  ;;  %s557_s22 = smov (!%p309_p3, %s121_s22), 0 }
  0x3f   : > { %s263_s25 = sshll.u32 %s98_s24, 4  ;;  %s227_s9 = scalar_lea.hbm %s502_s4, 144 }
  0x40   : > { %s100_s20 = scalar_lea.hbm %s546_s1, %s263_s25  ;;  %s230_s24 = scalar_lea.sflag %s107_s21, 1 [#allocation2] }
  0x41   : > { %301 = dma.general (%p309_p3), %s100_s20, 64, %s213_s10, %s107_s21, %s396_s28, [#allocation10], %s397_s30, 0  }
  0x42   : > { %s302_s27 = scalar_select %p309_p3, [#allocation4], [#allocation16] }
  0x43   : > { %304 = sst [smem:[#allocation12]] (%p309_p3), %s393_s5  ;;  %s274_s5 = sshll.u32 %s26_s16, 1 }
  0x44   : > { %s122_s3 = sld [smem:[%s302_s27 + %s557_s22]] }
  0x45   : > { %305 = sst [smem:[#allocation12 + $0x1]] (%p309_p3), %s394_s6  ;;  %s150_s6 = scalar_lea.sflag [#allocation2], %s274_s5 }
  0x46   : > { %306 = sst [smem:[#allocation12 + $0x2]] (%p309_p3), %s395_s13 }
  0x4a   : > { %s123_s7 = sshrl.u32 %s122_s3, 2  ;;  %s124_s11 = sand.u32 3, %s122_s3  }
  0x4b   : > { %s268_s8 = sshll.u32 %s123_s7, 4 }
  0x4c   : > { %s126_s18 = sadd.s32 %s268_s8, %s124_s11 }
  0x4d   : > { %s127_s23 = sadd.s32 %s457_s26, %s126_s18 }
  0x4e   : > { %s269_s10 = sshll.u32 %s127_s23, 4 }
  0x4f   : > { %s129_s19 = scalar_lea.hbm %s546_s1, %s269_s10 }
  0x50   : > { %307 = dma.general (%p309_p3), %s129_s19, 64, %s227_s9, %s230_s24, %s396_s28, [#allocation12], %s397_s30, 0  }
  0x51   : > { %369 = dma.done.wait %s150_s6, 64 }
  0x52   : > { %370 = vsyncadd %s150_s6, 4294967232  ;;  %s235_s13 = scalar_lea.sflag %s150_s6, 1 [#allocation2] }
  0x53   : > { %371 = dma.done.wait %s235_s13, 64 }
  0x54   : > { %372 = vsyncadd %s235_s13, 4294967232  ;;  %s16_s14 = sadd.s32 1, %s383_s14   ;;  %s548_s12 = smov %s439_s17 }
  0x55   : > { %p13_p4 = scmp.ge.s32.totalorder %s16_s14, 8   ;;  %s549_s13 = smov %s553_s15 }
  0x57   :  { %15 = sbr.rel (!%p13_p4) target bundleno = 7 (0x7), region = 51 }
  0x5c   :  { %157 = vsyncmov [#allocation2] }
  0x5f   :  { %s158_s0 = vpop.sfrf %157 }
  0x60   :  { %p276_p5 = scmp.ne.s32.totalorder %s158_s0, 0 }
  0x62   :  { %162 = shalt.err (%p276_p5)  }
  0x63   :  { %164 = vsyncmov [#allocation2 + $0x1] }
  0x66   :  { %s165_s16 = vpop.sfrf %164 }
  0x67   :  { %p277_p6 = scmp.ne.s32.totalorder %s165_s16, 0 }
  0x69   :  { %169 = shalt.err (%p277_p6)  }
  0x6a   :  { %171 = vsyncmov [#allocation2 + $0x2] }
  0x6d   :  { %s172_s26 = vpop.sfrf %171 }
  0x6e   :  { %p278_p7 = scmp.ne.s32.totalorder %s172_s26, 0 }
  0x70   :  { %176 = shalt.err (%p278_p7)  }
  0x71   :  { %178 = vsyncmov [#allocation2 + $0x3] }
  0x74   :  { %s179_s4 = vpop.sfrf %178 }
  0x75   :  { %p279_p8 = scmp.ne.s32.totalorder %s179_s4, 0 }
  0x77   :  { %183 = shalt.err (%p279_p8)  }

</bundles_post_ra>
